<compile_context>
chip_gen: v7x
topology: tpu7x:2x2x1
jax: 0.10.0
libtpu: 0.0.40
codegen_flags: <defaults>
</compile_context>

<pallas_src>
import math

import jax
import jax.numpy as jnp
from jax.experimental import pallas as pl
from jax.experimental.pallas import tpu as pltpu


def _round_up(a: int, b: int) -> int:
    return (a + b - 1) // b * b


def _normalize_tile(th: int) -> int:
    """Multiple of 128; floored to a multiple of 1024 when >= 1024 so the
    lane-fold width always divides the tile."""
    th = max(th, 128)
    if th >= 1024:
        th = (th // 1024) * 1024
    return th


def _bf16_vpu_ok() -> bool:
    """bf16-native VPU/EUP (v6e / v7x). v5e and older emulate bf16 -> keep f32."""
    try:
        kind = jax.devices()[0].device_kind.lower()
    except Exception:
        return False
    return ("v6" in kind) or ("v7" in kind)


def _make_logitnorm_ce_kernel(hw: int, tile_hw: int, fold_w: int, t: float,
                              compute_dtype, needs_mask: bool, needs_max: bool):
    """Build the kernel body (closure over trace-time constants)."""

    def kernel(x_ref, tgt_ref, o_ref):
        x = x_ref[...].astype(compute_dtype)            # (C, tile_hw)
        tgt = tgt_ref[...]                              # (1, tile_hw) int32

        # L2 norm over channels (dim=1 of NCHW); channels are on sublanes so
        # this is a short sublane reduction per pixel lane (f32 accumulation).
        sumsq = jnp.sum(x * x, axis=0, keepdims=True, dtype=jnp.float32)
        denom = (jnp.sqrt(sumsq) + 1e-07) * t           # matches torch ref
        # EUP approx reciprocal + one Newton-Raphson step: effectively exact
        # in f32, and moves the divide off the VALU slot (binding on v7x).
        inv = pl.reciprocal(denom, approx=True)
        inv = inv * (2.0 - denom * inv)                 # (1, tile_hw) f32

        z = x * inv.astype(compute_dtype)               # (C, tile_hw)

        if needs_max:
            # Small temperature: real max-subtracted log-sum-exp.
            m = jnp.max(z.astype(jnp.float32), axis=0, keepdims=True)
            e = jnp.exp(z - m.astype(compute_dtype))
            lse = jnp.log(jnp.sum(e, axis=0, keepdims=True,
                                  dtype=jnp.float32)) + m
        else:
            # |z_c| <= 1/t is small -> max-free log-sum-exp is safe.
            lse = jnp.log(jnp.sum(jnp.exp(z), axis=0, keepdims=True,
                                  dtype=jnp.float32))

        # z at the target class via a one-hot sublane select; no (C, T)
        # log_softmax materialization: per_pixel = lse - z_target.
        ch = jax.lax.broadcasted_iota(jnp.int32, z.shape, 0)
        z_tgt = jnp.sum(jnp.where(ch == tgt, z, 0.0), axis=0, keepdims=True,
                        dtype=jnp.float32)
        per_pixel = lse - z_tgt                         # (1, tile_hw) f32

        if needs_mask:
            # Only emitted when HW % tile_hw != 0 (trace-time check); keeps
            # interior-tile code paths free of iota/compare/select work.
            p = pl.program_id(1)
            lane = jax.lax.broadcasted_iota(jnp.int32, per_pixel.shape, 1)
            valid = (p * tile_hw + lane) < hw
            per_pixel = jnp.where(valid, per_pixel, 0.0)

        # Fold tile_hw lanes to a lane-dense (1, fold_w) partial row with a
        # pairwise tree of vreg-aligned static slices (log-depth VPU chain).
        nslices = tile_hw // fold_w
        parts = [per_pixel[:, k * fold_w:(k + 1) * fold_w]
                 for k in range(nslices)]
        while len(parts) > 1:
            nxt = [parts[i] + parts[i + 1] for i in range(0, len(parts) - 1, 2)]
            if len(parts) % 2:
                nxt.append(parts[-1])
            parts = nxt
        o_ref[...] = parts[0]

    return kernel


def logit_norm_loss(x, target, t: float = 1.0):
    """x: (N, C, H, W) float, target: (N, H, W) int -> scalar mean loss.

    # TODO(synk): optional per-class NLLLoss `weight` / ignore_index are not
    # implemented (module default is weight=None).
    """
    N, C, H, W = x.shape
    HW = H * W
    hw_padded = _round_up(HW, 128)

    # ---- compute dtype: bf16 kept end-to-end only where the VPU is bf16 ----
    if x.dtype == jnp.bfloat16 and _bf16_vpu_ok():
        compute_dtype = jnp.bfloat16
    else:
        compute_dtype = jnp.float32

    # ---- tile selection: VMEM live-set budget drives the tile ----------------
    # Live bytes per pixel ~= double-buffered input block + ~3 block-sized
    # elementwise temps + a handful of (1, T) f32 rows (targets, norms, lse,
    # fold slices).  Keep the total under the scoped limit with headroom so
    # the double-buffered working set also fits v7x's 64 MiB physical VMEM.
    VMEM_LIMIT = 40 * 1024 * 1024
    in_bytes = jnp.dtype(x.dtype).itemsize
    comp_bytes = jnp.dtype(compute_dtype).itemsize
    live_bytes_per_px = 2 * C * in_bytes + 3 * C * comp_bytes + 12 * 4
    vmem_cap = max(128, ((VMEM_LIMIT - 8 * 1024 * 1024)
                         // live_bytes_per_px) // 128 * 128)

    tile_hw = _normalize_tile(min(vmem_cap, hw_padded))
    num_tiles = pl.cdiv(HW, tile_hw)

    # v7x megacore: make sure the (N, num_tiles) grid has >= 2 cells.
    if N * num_tiles < 2 and hw_padded > 128:
        tile_hw = _normalize_tile(_round_up((hw_padded + 1) // 2, 128))
        num_tiles = pl.cdiv(HW, tile_hw)

    needs_mask = (HW % tile_hw) != 0
    # Max-free LSE is safe while C * exp(1/t) stays well below f32 overflow.
    needs_max = (1.0 / float(t)) > (80.0 - math.log(max(C, 2)))
    fold_w = min(tile_hw, 1024)                 # divides tile_hw by construction

    # ---- glue: pure views, no transpose, keep native dtype -------------------
    x3 = x.reshape(N, C, HW)
    tgt3 = target.reshape(N, 1, HW).astype(jnp.int32)

    partials = pl.pallas_call(
        _make_logitnorm_ce_kernel(HW, tile_hw, fold_w, float(t),
                                  compute_dtype, needs_mask, needs_max),
        out_shape=jax.ShapeDtypeStruct((N, num_tiles, 1, fold_w), jnp.float32),
        grid_spec=pltpu.PrefetchScalarGridSpec(
            num_scalar_prefetch=0,
            grid=(N, num_tiles),
            in_specs=[
                pl.BlockSpec((None, C, tile_hw), lambda n, p: (n, 0, p)),
                pl.BlockSpec((None, 1, tile_hw), lambda n, p: (n, 0, p)),
            ],
            out_specs=pl.BlockSpec((None, None, 1, fold_w),
                                   lambda n, p: (n, p, 0, 0)),
        ),
        compiler_params=pltpu.CompilerParams(
            # independent per-tile partial sums -> fully megacore-shardable
            dimension_semantics=("parallel", "parallel"),
            vmem_limit_bytes=VMEM_LIMIT,
        ),
    )(x3, tgt3)

    # Final reduction + mean (NLLLoss default reduction='mean') in plain JAX.
    return jnp.sum(partials, dtype=jnp.float32) / (N * HW)


def _reference(x, target, t=1.0):
    """Pure-JAX reference mirroring the PyTorch module."""
    norms = jnp.sqrt(jnp.sum(x * x, axis=1, keepdims=True)) + 1e-07
    z = x / norms / t
    logsm = jax.nn.log_softmax(z, axis=1)                                # (N, C, H, W)
    picked = jnp.take_along_axis(logsm, target[:, None, :, :], axis=1)   # (N, 1, H, W)
    return -jnp.mean(picked)


if __name__ == "__main__":
    key = jax.random.PRNGKey(0)
    N, C, H, W = 2, 4, 16, 16
    kx, kt = jax.random.split(key)
    x = jax.random.normal(kx, (N, C, H, W), dtype=jnp.float32)
    target = jax.random.randint(kt, (N, H, W), 0, C, dtype=jnp.int32)

    loss = logit_norm_loss(x, target, t=1.0)
    loss = jax.block_until_ready(loss)

    ref = _reference(x, target, t=1.0)
    assert jnp.allclose(loss, ref, atol=1e-5, rtol=1e-5), (loss, ref)

    print("KERNEL_OK")
</pallas_src>

<mosaic_0001>
module attributes {stable_mosaic.version = 11 : i64} {
  func.func @kernel(%arg0: i32, %arg1: i32, %arg2: memref<1x4x256xf32, #tpu.memory_space<vmem>>, %arg3: memref<1x1x256xi32, #tpu.memory_space<vmem>>, %arg4: memref<1x1x1x256xf32, #tpu.memory_space<vmem>>) attributes {dimension_semantics = [#tpu.dimension_semantics<parallel>, #tpu.dimension_semantics<parallel>], iteration_bounds = array<i64: 2, 1>, scalar_prefetch = 0 : i64, scratch_operands = 0 : i64, tpu.core_type = #tpu.core_type<tc>, window_params = [{transform_indices = @transform_0, window_bounds = array<i64: 1, 4, 256>}, {transform_indices = @transform_1, window_bounds = array<i64: 1, 1, 256>}, {transform_indices = @transform_2, window_bounds = array<i64: 1, 1, 1, 256>}]} {
    %c0 = arith.constant 0 : index
    %c0_0 = arith.constant 0 : index
    %c0_1 = arith.constant 0 : index
    %0 = vector.load %arg2[%c0, %c0_0, %c0_1] : memref<1x4x256xf32, #tpu.memory_space<vmem>>, vector<1x4x256xf32>
    %1 = vector.shape_cast %0 : vector<1x4x256xf32> to vector<4x256xf32>
    %c0_2 = arith.constant 0 : index
    %c0_3 = arith.constant 0 : index
    %c0_4 = arith.constant 0 : index
    %2 = vector.load %arg3[%c0_2, %c0_3, %c0_4] : memref<1x1x256xi32, #tpu.memory_space<vmem>>, vector<1x1x256xi32>
    %3 = vector.shape_cast %2 : vector<1x1x256xi32> to vector<1x256xi32>
    %4 = arith.mulf %1, %1 : vector<4x256xf32>
    %cst = arith.constant dense<0.000000e+00> : vector<256xf32>
    %5 = vector.multi_reduction <add>, %4, %cst [0] : vector<4x256xf32> to vector<256xf32>
    %6 = vector.shape_cast %5 : vector<256xf32> to vector<1x256xf32>
    %7 = math.sqrt %6 : vector<1x256xf32>
    %cst_5 = arith.constant 1.000000e-07 : f32
    %8 = vector.broadcast %cst_5 : f32 to vector<1x256xf32>
    %9 = arith.addf %7, %8 : vector<1x256xf32>
    %cst_6 = arith.constant 1.000000e+00 : f32
    %10 = vector.broadcast %cst_6 : f32 to vector<1x256xf32>
    %11 = arith.mulf %9, %10 : vector<1x256xf32>
    %12 = tpu.reciprocal %11 {approx = true} : vector<1x256xf32> -> vector<1x256xf32>
    %13 = arith.mulf %11, %12 : vector<1x256xf32>
    %cst_7 = arith.constant 2.000000e+00 : f32
    %14 = vector.broadcast %cst_7 : f32 to vector<1x256xf32>
    %15 = arith.subf %14, %13 : vector<1x256xf32>
    %16 = arith.mulf %12, %15 : vector<1x256xf32>
    %17 = vector.broadcast %16 : vector<1x256xf32> to vector<4x256xf32>
    %18 = arith.mulf %1, %17 : vector<4x256xf32>
    %19 = math.exp %18 : vector<4x256xf32>
    %cst_8 = arith.constant dense<0.000000e+00> : vector<256xf32>
    %20 = vector.multi_reduction <add>, %19, %cst_8 [0] : vector<4x256xf32> to vector<256xf32>
    %21 = vector.shape_cast %20 : vector<256xf32> to vector<1x256xf32>
    %22 = math.log %21 : vector<1x256xf32>
    %23 = tpu.iota {dimensions = array<i32: 0>} : vector<4x256xi32>
    %24 = vector.broadcast %3 : vector<1x256xi32> to vector<4x256xi32>
    %25 = arith.cmpi eq, %23, %24 : vector<4x256xi32>
    %cst_9 = arith.constant 0.000000e+00 : f32
    %26 = vector.broadcast %cst_9 : f32 to vector<4x256xf32>
    %27 = arith.select %25, %18, %26 : vector<4x256xi1>, vector<4x256xf32>
    %cst_10 = arith.constant dense<0.000000e+00> : vector<256xf32>
    %28 = vector.multi_reduction <add>, %27, %cst_10 [0] : vector<4x256xf32> to vector<256xf32>
    %29 = vector.shape_cast %28 : vector<256xf32> to vector<1x256xf32>
    %30 = arith.subf %22, %29 : vector<1x256xf32>
    %c0_11 = arith.constant 0 : index
    %c0_12 = arith.constant 0 : index
    %c0_13 = arith.constant 0 : index
    %c0_14 = arith.constant 0 : index
    %31 = vector.load %arg4[%c0_11, %c0_12, %c0_13, %c0_14] : memref<1x1x1x256xf32, #tpu.memory_space<vmem>>, vector<1x1x1x256xf32>
    %32 = vector.shape_cast %31 : vector<1x1x1x256xf32> to vector<1x256xf32>
    %33 = vector.shape_cast %30 : vector<1x256xf32> to vector<1x1x1x256xf32>
    tpu.vector_store %arg4[%c0_11, %c0_12, %c0_13, %c0_14], %33 {strides = array<i32>} : memref<1x1x1x256xf32, #tpu.memory_space<vmem>>, vector<1x1x1x256xf32>,
    return
  }
  func.func @transform_0(%arg0: i32, %arg1: i32) -> (i32, i32, i32) {
    %c0_i32 = arith.constant 0 : i32
    %c0_i32_0 = arith.constant 0 : i32
    return %arg0, %c0_i32, %arg1 : i32, i32, i32
  }
  func.func @transform_1(%arg0: i32, %arg1: i32) -> (i32, i32, i32) {
    %c0_i32 = arith.constant 0 : i32
    %c0_i32_0 = arith.constant 0 : i32
    return %arg0, %c0_i32, %arg1 : i32, i32, i32
  }
  func.func @transform_2(%arg0: i32, %arg1: i32) -> (i32, i32, i32, i32) {
    %c0_i32 = arith.constant 0 : i32
    %c0_i32_0 = arith.constant 0 : i32
    %c0_i32_1 = arith.constant 0 : i32
    return %arg0, %arg1, %c0_i32, %c0_i32_0 : i32, i32, i32, i32
  }
}

</mosaic_0001>

<bundles_post_ra>
// kernel: tpu_custom_call.1
= control target key start
LH: loop header
LB: loop body
LE: loop exit
PB: predicated region body
PF: predicated region fallthrough
CT: control target
= control target key end

     0   :  { %7 = vsyncpa [#allocation3], 0  ;;  %s979_s0 = inlined_call_operand.hbm [shape: f32[2,4,256], index: 0, kind: input, shape index: {}]   ;;  %s980_s1 = inlined_call_operand.hbm [shape: s32[2,1,256], index: 1, kind: input, shape index: {}]   ;;  %s981_s2 = inlined_call_operand.hbm [shape: f32[2,1,1,256], index: 2, kind: output, shape index: {}]  }
   0x1   :  { %9 = vsyncpa [#allocation3 + $0x1], 0 }
   0x2   :  { %10 = vsyncpa [#allocation6], 0 }
   0x3   :  { %12 = vsyncpa [#allocation6 + $0x1], 0 }
   0x4   :  { %13 = vsyncpa [#allocation4], 0 }
   0x5   :  { %15 = vsyncpa [#allocation4 + $0x1], 0  ;;  %s749_s9 = smov 0   ;;  %s751_s10 = smov 0  }
   0x6   :  { %s753_s11 = smov 0   ;;  %s755_s12 = smov 0  }
   0x7   :  { %s757_s13 = smov 0   ;;  %s759_s14 = smov 0  }
   0x8 LB: > { %s478_s15 = sadd.s32 4294967295, %s728_s14   ;;  %s479_s16 = sadd.s32 4294967294, %s728_s14   ;;  %s728_s14 = sphi %s759_s14, %s21_s14   ;;  %s724_s13 = sphi %s757_s13, %s1001_s13   ;;  %s720_s12 = sphi %s755_s12, %s1000_s12   ;;  %s716_s11 = sphi %s753_s11, %s999_s11   ;;  %s712_s10 = sphi %s751_s10, %s998_s10   ;;  %s708_s9 = sphi %s749_s9, %s997_s9  }
   0x9   : > { %s33_s17 = sadd.s32 1, %s724_s13  ;;  %s42_s18 = sadd.s32 1, %s716_s11 }
   0xa   : > { %p35_p0 = scmp.ge.s32.totalorder %s33_s17, 2  ;;  %p49_p1 = scmp.ne.s32.totalorder %s716_s11, %s712_s10 }
   0xb   : > { %p50_p2 = scmp.eq.s32.totalorder %s728_s14, 0  ;;  %p55_p3 = scmp.ne.s32.totalorder %s712_s10, %s708_s9 }
   0xc   : > { %s1003_s17 = smov (%p35_p0, %s33_s17), 0  ;;  %p56_p5 = scmp.eq.s32.totalorder %s478_s15, 0 }
   0xd   : > { %p790_p4 = por %p50_p2, %p49_p1  ;;  %s37_s20 = ssub.s32 %s724_s13, %s1003_s17 }
   0xe   : > { %p109_p6 = scmp.eq.s32.totalorder %s478_s15, 1  ;;  %p40_p7 = scmp.eq.s32.totalorder %s37_s20, 0 }
   0xf   : > { %p796_p8 = por %p56_p5, %p55_p3  ;;  %p115_p10 = scmp.eq.s32.totalorder %s479_s16, 1 }
  0x10   : > { %p800_p9 = por %p109_p6, %p49_p1  ;;  %p517_p13 = scmp.lt.s32.totalorder %s728_s14, 2 }
  0x11   : > { %s985_s21 = scalar_select %p796_p8, 1, 0 }
  0x12   : > { %s986_s22 = scalar_select %p800_p9, 1, 0 }
  0x13   : > { %s805_s23 = scalar_select %p40_p7, %s716_s11, %s42_s18  }
  0x14   : > { %p807_p11 = por %p115_p10, %p55_p3  ;;  %s814_s25 = sand.u32 1, %s716_s11  }
  0x15   : > { %s482_s26 = sshll.u32 %s814_s25, 3  ;;  %s497_s27 = sshll.u32 %s724_s13, 7 }
  0x16   : > { %s987_s24 = scalar_select %p807_p11, 1, 0 }
  0x17   : > { %s821_s30 = scalar_lea.hbm %s979_s0, %s497_s27  ;;  %s139_s3 = scalar_lea.vmem [#allocation2], %s482_s26 }
  0x18   : > { %s149_s4 = sshll.u32 %s139_s3, 4  ;;  %p827_p0 = pnand %p517_p13, %p790_p4  ;;  %s823_s4 = int_to_ptr.vmem [resolvable:$true] %s149_s4 }
  0x19   : > { %s136_s6 = scalar_lea.sflag [#allocation3], %s814_s25  ;;  %s582_s7 = scalar_lea.hbm %s821_s30, 128 }
  0x1a   : > { %p583_p3 = scmp.ne.s32.totalorder %s821_s30, %s582_s7  ;;  %p584_p5 = pneg %p827_p0 }
  0x1b   : > { %s587_s16 = scalar_lea.hbm %s979_s0, 256  ;;  %p588_p4 = scmp.lt.u32.totalorder %s821_s30, %s979_s0 }
  0x1c   : > { %p585_p6 = pnand %p584_p5, %p583_p3  ;;  %p589_p10 = scmp.lt.u32.totalorder %s587_s16, %s582_s7 }
  0x1d   : > { %p591_p12 = scmp.lt.u32.totalorder %s582_s7, %s821_s30 }
  0x1e   : > { %p586_p7 = pneg %p585_p6  ;;  %p590_p13 = por %p589_p10, %p588_p4 }
  0x20   : > { %p592_p1 = por %p591_p12, %p590_p13 }
  0x22   : > { %p593_p2 = pnand %p592_p1, %p586_p7 }
  0x24   : > { %596 = shalt.err (!%p593_p2)
}
  0x25   : > { %s597_s20 = scalar_lea.vmem %s823_s4, 128  ;;  %s730_s26 = smov [#allocation2]  }
  0x26   : > { %p598_p3 = scmp.ne.s32.totalorder %s823_s4, %s597_s20  ;;  %s602_s27 = sshll.u32 %s730_s26, 4  ;;  %s603_s27 = int_to_ptr.vmem [resolvable:$false] %s602_s27 }
  0x27   : > { %s604_s28 = scalar_lea.vmem %s603_s27, 256  ;;  %p605_p9 = scmp.lt.s32.totalorder %s823_s4, %s603_s27 }
  0x28   : > { %p600_p6 = pnand %p598_p3, %p584_p5  ;;  %p606_p4 = scmp.lt.s32.totalorder %s604_s28, %s597_s20 }
  0x2a   : > { %p601_p11 = pneg %p600_p6  ;;  %p607_p10 = por %p606_p4, %p605_p9 }
  0x2c   : > { %p608_p12 = pnand %p607_p10, %p601_p11 }
  0x2e   : > { %611 = shalt.err (!%p608_p12)
}
  0x2f   : > { %509 = dma.hbm_to_vmem [thread:$0]  (!%p827_p0), %s821_s30, 128, %s823_s4, %s136_s6  }
  0x30   : > { %p989_p1 = scmp.lt.s32.totalorder %s728_s14, 3  ;;  %p990_p2 = scmp.ge.s32.totalorder %s728_s14, 1 }
  0x31   : > { %s485_s3 = sshll.u32 %s814_s25, 1  ;;  %s498_s7 = sshll.u32 %s724_s13, 5 }
  0x32   : > { %p863_p7 = pnand %p990_p2, %p989_p1  ;;  %s872_s16 = scalar_lea.hbm %s980_s1, %s498_s7 }
  0x33   : > { %s160_s18 = scalar_lea.vmem [#allocation5], %s485_s3  ;;  %s157_s30 = scalar_lea.sflag [#allocation6], %s814_s25 }
  0x34   : > { %s991_s29 = scalar_select %p863_p7, 1, 0 }
  0x35   : > { %s170_s19 = sshll.u32 %s160_s18, 4  ;;  %s612_s4 = scalar_lea.hbm %s872_s16, 32  ;;  %s171_s19 = int_to_ptr.vmem [resolvable:$true] %s170_s19 }
  0x36   : > { %p613_p9 = scmp.ne.s32.totalorder %s872_s16, %s612_s4  ;;  %s617_s26 = scalar_lea.hbm %s980_s1, 64 }
  0x37   : > { %p618_p3 = scmp.lt.u32.totalorder %s872_s16, %s980_s1  ;;  %p619_p6 = scmp.lt.u32.totalorder %s617_s26, %s612_s4 }
  0x38   : > { %p615_p11 = pnand %p613_p9, %p584_p5  ;;  %p621_p10 = scmp.lt.u32.totalorder %s612_s4, %s872_s16 }
  0x39   : > { %p620_p4 = por %p619_p6, %p618_p3 }
  0x3a   : > { %p616_p13 = pneg %p615_p11 }
  0x3b   : > { %p622_p12 = por %p621_p10, %p620_p4 }
  0x3d   : > { %p623_p1 = pnand %p622_p12, %p616_p13 }
  0x3f   : > { %626 = shalt.err (!%p623_p1)
}
  0x40   : > { %s627_s25 = scalar_lea.vmem %s171_s19, 32  ;;  %s731_s3 = smov [#allocation5]  }
  0x41   : > { %p628_p2 = scmp.ne.s32.totalorder %s171_s19, %s627_s25  ;;  %s632_s7 = sshll.u32 %s731_s3, 4  ;;  %s633_s7 = int_to_ptr.vmem [resolvable:$false] %s632_s7 }
  0x42   : > { %s634_s8 = scalar_lea.vmem %s633_s7, 64  ;;  %p635_p8 = scmp.lt.s32.totalorder %s171_s19, %s633_s7 }
  0x43   : > { %p630_p9 = pnand %p628_p2, %p584_p5  ;;  %p636_p7 = scmp.lt.s32.totalorder %s634_s8, %s627_s25 }
  0x45   : > { %p631_p11 = pneg %p630_p9  ;;  %p637_p3 = por %p636_p7, %p635_p8 }
  0x47   : > { %p638_p6 = pnand %p637_p3, %p631_p11 }
  0x49   : > { %641 = shalt.err (!%p638_p6)
}
  0x4a   : > { %512 = dma.hbm_to_vmem [thread:$0]  (!%p827_p0), %s872_s16, 32, %s171_s19, %s157_s30  }
  0x4b   : > { %p992_p13 = scmp.ne.s32.totalorder %s991_s29, 0 }
  0x4c   : > { %s897_s15 = sand.u32 (!%p992_p13), 1, %s712_s10   ;;  %p993_p5 = scmp.ne.s32.totalorder (!%p992_p13), %s985_s21, 0 }
  0x4d   : > { %179 = sbr.rel (%p992_p13) target bundleno = 207 (0xcf), region = 28  ;;  %s489_s18 = sshll.u32 (!%p992_p13), %s897_s15, 3 }
  0x4e   : > { %s182_s4 = scalar_lea.sflag (!%p992_p13), [#allocation3], %s897_s15  ;;  %s185_s6 = scalar_lea.vmem (!%p992_p13), [#allocation2], %s489_s18 }
  0x54   : > { %695 = dma.done.wait (%p993_p5), %s182_s4, 128  }
  0x55   : > { %697 = vsyncadd (%p993_p5), %s182_s4, 4294967168  ;;  %s490_s5 = sshll.u32 %s897_s15, 1  ;;  %s191_s29 = scalar_lea.sflag [#allocation6], %s897_s15 }
  0x56   : > { %s909_s16 = scalar_lea.vmem [#allocation5], %s490_s5 }
  0x57   : > { %699 = dma.done.wait (%p993_p5), %s191_s29, 32  }
  0x58   : > { %701 = vsyncadd (%p993_p5), %s191_s29, 4294967264  ;;  %v222_v0 = vld [vmem:[%s185_s6] sm:$0xff]  ;;  %vm228_vm0 = vcmask 1043456   ;;  %v295_v34 = vlaneseq  ;;  %v223_v42 = vld [vmem:[%s909_s16] sm:$0x3]  ;;  %s219_s21 = scalar_lea.vmem [#allocation7], %s490_s5 }
  0x59   : > { %v224_v1 = vmul.f32 %v222_v0, %v222_v0  ;;  %s368_s19 = sshll.u32 %s219_s21, 4  ;;  %s499_s30 = sshll.u32 %s720_s12, 5  ;;  %s927_s19 = int_to_ptr.vmem [resolvable:$true] %s368_s19 }
  0x5a   : > { %v296_v38 = vshrl.u32 %v295_v34, 7  ;;  %vm348_vm7 = vcmp.lt.s32.totalorder %v295_v34, 256  ;;  %s932_s27 = scalar_lea.hbm %s981_s2, %s499_s30  ;;  %s352_s28 = scalar_lea.sflag [#allocation4], %s897_s15 }
  0x5b   : > { %v226_v2 = vcombine.high %v224_v1, %v224_v1  ;;  %v229_v3 = vsel %vm228_vm0, %v224_v1, 0.0  ;;  %s642_s25 = scalar_lea.vmem %s927_s19, 32  ;;  %p994_p0 = scmp.ne.s32.totalorder %s986_s22, 0 }
  0x5c   : > { %v230_v4 = vrot.slane %v229_v3, 4  ;;  %v299_v41 = vsub.s32 0, %v296_v38  ;;  %v303_v44 = vsub.s32 1, %v296_v38  ;;  %p643_p8 = scmp.ne.s32.totalorder %s927_s19, %s642_s25  ;;  %s733_s12 = smov [#allocation7]  }
  0x5d   : > { %v236_v5 = vsel %vm228_vm0, %v226_v2, 0.0  ;;  %s646_s3 = sshll.u32 %s733_s12, 4  ;;  %s647_s3 = int_to_ptr.vmem [resolvable:$false] %s646_s3 }
  0x5e   : > { %v231_v6 = vadd.f32 %v230_v4, %v229_v3  ;;  %v237_v7 = vrot.slane %v236_v5, 4  ;;  %v300_v45 = vrot.slane %v223_v42, %v299_v41  ;;  %v304_v46 = vrot.slane %v223_v42, %v303_v44  ;;  %p644_p7 = pnand %p643_p8, %p994_p0  ;;  %s648_s7 = scalar_lea.vmem %s647_s3, 64 }
  0x5f   : > { %p649_p10 = scmp.lt.s32.totalorder %s927_s19, %s647_s3  ;;  %p650_p12 = scmp.lt.s32.totalorder %s648_s7, %s642_s25 }
  0x60   : > { %v232_v8 = vrot.slane %v231_v6, 2  ;;  %v238_v9 = vadd.f32 %v237_v7, %v236_v5  ;;  %vm305_vm5 = vcmp.eq.s32.totalorder %v296_v38, %v300_v45  ;;  %vm306_vm6 = vcmp.eq.s32.totalorder %v296_v38, %v304_v46  ;;  %p645_p4 = pneg %p644_p7 }
  0x61   : > { %p651_p1 = por %p650_p12, %p649_p10 }
  0x62   : > { %v233_v10 = vadd.f32 %v232_v8, %v231_v6  ;;  %v239_v11 = vrot.slane %v238_v9, 2 }
  0x63   : > { %p652_p2 = pnand %p651_p1, %p645_p4 }
  0x64   : > { %v234_v12 = vrot.slane %v233_v10, 1  ;;  %v240_v13 = vadd.f32 %v239_v11, %v238_v9 }
  0x66   : > { %v235_v14 = vadd.f32 %v234_v12, %v233_v10  ;;  %v241_v15 = vrot.slane %v240_v13, 1 }
  0x68   : > { %v242_v16 = vadd.f32 %v241_v15, %v240_v13  ;;  %568 = vrsqrt.f32 %v235_v14  ;;  %vm245_vm1 = vcmp.eq.f32.partialorder %v235_v14, inf  ;;  %v248_v18 = vand.u32 2147483648, %v235_v14 }
  0x69   : > { %vm247_vm2 = vcmp.eq.f32.partialorder %v235_v14, 0.0 }
  0x6a   : > { %570 = vrsqrt.f32 %v242_v16  ;;  %vm252_vm3 = vcmp.eq.f32.partialorder %v242_v16, inf  ;;  %v255_v21 = vand.u32 2147483648, %v242_v16  ;;  %vm254_vm4 = vcmp.eq.f32.partialorder %v242_v16, 0.0 }
  0x72   : > { %v569_v17 = vpop.eup %568 }
  0x73   : > { %v244_v19 = vmul.f32 %v569_v17, %v235_v14 }
  0x74   : > { %v571_v20 = vpop.eup %570 }
  0x75   : > { %v246_v22 = vsel %vm245_vm1, %v235_v14, %v244_v19  ;;  %v251_v23 = vmul.f32 %v571_v20, %v242_v16  ;;  %v732_v14 = vmov 1966171168  }
  0x76   : > { %v249_v24 = vsel %vm247_vm2, %v248_v18, %v246_v22  ;;  %v332_v15 = vunpack.c.l.s4 %v732_v14 }
  0x77   : > { %v253_v25 = vsel %vm252_vm3, %v242_v16, %v251_v23  ;;  %v257_v26 = vadd.f32 1e-07, %v249_v24 }
  0x78   : > { %v256_v27 = vsel %vm254_vm4, %v255_v21, %v253_v25  ;;  %v333_v20 = vunpack.c.0.s8 %v332_v15 }
  0x79   : > { %v258_v28 = vadd.f32 1e-07, %v256_v27  ;;  %572 = vrcp.f32 %v257_v26 }
  0x7a   : > { %v336_v25 = vsub.s32 %v333_v20, %v296_v38 }
  0x7b   : > { %574 = vrcp.f32 %v258_v28 }
  0x83   : > { %v573_v29 = vpop.eup %572 }
  0x84   : > { %v261_v30 = vmul.f32 %v573_v29, %v257_v26 }
  0x85   : > { %v575_v31 = vpop.eup %574 }
  0x86   : > { %v262_v32 = vmul.f32 %v575_v31, %v258_v28  ;;  %v263_v33 = vsub.f32 2.0, %v261_v30 }
  0x88   : > { %v264_v35 = vsub.f32 2.0, %v262_v32  ;;  %v265_v36 = vmul.f32 %v573_v29, %v263_v33 }
  0x8a   : > { %v266_v37 = vmul.f32 %v575_v31, %v264_v35 }
  0x8c   : > { %v269_v39 = vcombine.low %v265_v36, %v266_v37 }
  0x8e   : > { %v271_v40 = vmul.f32 %v269_v39, %v222_v0 }
  0x90   : > { %v272_v43 = vmul.f32 1.442695, %v271_v40  ;;  %v308_v47 = vcombine.high %v271_v40, %v271_v40  ;;  %v310_v48 = vsel %vm305_vm5, %v271_v40, 0.0 }
  0x91   : > { %v312_v51 = vsel %vm228_vm0, %v310_v48, 0.0 }
  0x92   : > { %576 = vpow2.f32 %v272_v43  ;;  %v311_v49 = vsel %vm306_vm6, %v308_v47, 0.0  ;;  %v313_v57 = vrot.slane %v312_v51, 4 }
  0x93   : > { %v319_v55 = vsel %vm228_vm0, %v311_v49, 0.0 }
  0x94   : > { %v320_v60 = vrot.slane %v319_v55, 4  ;;  %v314_v63 = vadd.f32 %v313_v57, %v312_v51 }
  0x96   : > { %v321_v2 = vadd.f32 %v320_v60, %v319_v55  ;;  %v315_v5 = vrot.slane %v314_v63, 2 }
  0x98   : > { %v322_v8 = vrot.slane %v321_v2, 2  ;;  %v316_v10 = vadd.f32 %v315_v5, %v314_v63 }
  0x9a   : > { %v323_v11 = vadd.f32 %v322_v8, %v321_v2  ;;  %v317_v12 = vrot.slane %v316_v10, 1 }
  0x9c   : > { %v577_v50 = vpop.eup %576  ;;  %v324_v13 = vrot.slane %v323_v11, 1  ;;  %v318_v16 = vadd.f32 %v317_v12, %v316_v10 }
  0x9d   : > { %v275_v52 = vcombine.high %v577_v50, %v577_v50  ;;  %v277_v53 = vsel %vm228_vm0, %v577_v50, 0.0 }
  0x9e   : > { %v278_v54 = vrot.slane %v277_v53, 4  ;;  %v325_v19 = vadd.f32 %v324_v13, %v323_v11 }
  0x9f   : > { %v284_v56 = vsel %vm228_vm0, %v275_v52, 0.0 }
  0xa0   : > { %v279_v58 = vadd.f32 %v278_v54, %v277_v53  ;;  %v285_v59 = vrot.slane %v284_v56, 4 }
  0xa2   : > { %v280_v61 = vrot.slane %v279_v58, 2  ;;  %v286_v62 = vadd.f32 %v285_v59, %v284_v56 }
  0xa4   : > { %v281_v0 = vadd.f32 %v280_v61, %v279_v58  ;;  %v287_v1 = vrot.slane %v286_v62, 2 }
  0xa6   : > { %v282_v3 = vrot.slane %v281_v0, 1  ;;  %v288_v4 = vadd.f32 %v287_v1, %v286_v62 }
  0xa8   : > { %v283_v6 = vadd.f32 %v282_v3, %v281_v0  ;;  %v289_v7 = vrot.slane %v288_v4, 1 }
  0xaa   : > { %v290_v9 = vadd.f32 %v289_v7, %v288_v4  ;;  %578 = vlog2.f32 %v283_v6 }
  0xac   : > { %580 = vlog2.f32 %v290_v9 }
  0xb4   : > { %v579_v17 = vpop.eup %578 }
  0xb5   : > { %v292_v18 = vmul.f32 0.6931472, %v579_v17 }
  0xb6   : > { %v581_v21 = vpop.eup %580 }
  0xb7   : > { %v294_v22 = vmul.f32 0.6931472, %v581_v21  ;;  %v326_v23 = vsub.f32 %v292_v18, %v318_v16 }
  0xb9   : > { %v327_v24 = vsub.f32 %v294_v22, %v325_v19 }
  0xbb   : > { %v330_v26 = vcombine.low %v326_v23, %v327_v24 }
  0xbd   : > { %v337_v27 = vrot.slane %v330_v26, %v336_v25 }
  0xbf   : > { %v344_v28 = vrot.slane %v337_v27, %v336_v25 }
  0xc1   : > { %350 = vst.msk [vmem:[%s219_s21] sm:$0x3] %vm348_vm7, %v344_v28 }
  0xc2   : > { %655 = shalt.err (!%p652_p2)
}
  0xc3   : > { %s656_s8 = scalar_lea.hbm %s932_s27, 32  ;;  %s660_s4 = scalar_lea.hbm %s981_s2, 64 }
  0xc4   : > { %p657_p9 = scmp.ne.s32.totalorder %s932_s27, %s656_s8  ;;  %p661_p6 = scmp.lt.u32.totalorder %s932_s27, %s981_s2 }
  0xc5   : > { %p662_p13 = scmp.lt.u32.totalorder %s660_s4, %s656_s8  ;;  %p664_p8 = scmp.lt.u32.totalorder %s656_s8, %s932_s27 }
  0xc6   : > { %p658_p11 = pnand %p657_p9, %p994_p0 }
  0xc7   : > { %p663_p5 = por %p662_p13, %p661_p6 }
  0xc8   : > { %p659_p3 = pneg %p658_p11 }
  0xc9   : > { %p665_p7 = por %p664_p8, %p663_p5 }
  0xcb   : > { %p666_p4 = pnand %p665_p7, %p659_p3 }
  0xcd   : > { %669 = shalt.err (!%p666_p4)
}
  0xce   : > { %504 = dma.vmem_to_hbm [thread:$0]  (%p994_p0), %s927_s19, 32, %s932_s27, %s352_s28  }
  0xcf PF: > { %s380_s29 = sand.u32 1, %s708_s9   ;;  %p995_p10 = scmp.ne.s32.totalorder %s987_s24, 0 }
  0xd0   : > { %p996_p12 = scmp.ge.s32.totalorder %s728_s14, 2  ;;  %s381_s16 = scalar_lea.sflag [#allocation4], %s380_s29 }
  0xd2   : > { %p514_p1 = pnand %p996_p12, %p995_p10 }
  0xd4   : > { %703 = dma.done.wait (!%p514_p1), %s381_s16, 32  }
  0xd5   : > { %705 = vsyncadd (!%p514_p1), %s381_s16, 4294967264  ;;  %s21_s14 = sadd.s32 1, %s728_s14   ;;  %s997_s9 = smov %s712_s10 }
  0xd6   : > { %p18_p2 = scmp.ge.s32.totalorder %s21_s14, 4   ;;  %s998_s10 = smov %s716_s11 }
  0xd7   : > { %s999_s11 = smov %s805_s23  ;;  %s1000_s12 = smov %s724_s13 }
  0xd8   : > { %s1001_s13 = smov %s1003_s17  ;;  %20 = sbr.rel (!%p18_p2) target bundleno = 8 (0x8), region = 86 }
  0xdf   :  { %386 = vsyncpa [#allocation3], 1 }
  0xe0   :  { %388 = vsyncpa [#allocation3 + $0x1], 1 }
  0xe1   :  { %389 = vsyncpa [#allocation6], 1 }
  0xe2   :  { %391 = vsyncpa [#allocation6 + $0x1], 1 }
  0xe3   :  { %392 = vsyncpa [#allocation4], 1 }
  0xe4   :  { %394 = vsyncpa [#allocation4 + $0x1], 1 }

</bundles_post_ra>
